<compile_context>
chip_gen: v6e
topology: v6e:2x2x1
jax: 0.10.0
libtpu: 0.0.40
codegen_flags: <defaults>
</compile_context>

<pallas_src>
import jax
import jax.numpy as jnp
from jax import lax
from jax.experimental import pallas as pl
from jax.experimental.pallas import tpu as pltpu


def _round_up(x, m):
    return ((x + m - 1) // m) * m


def siamese_kernel(z1_ref, z2_ref, w1_ref, w2_ref, p_ref, o_ref):
    bt = z1_ref.shape[0]
    h1_dim = w1_ref.shape[1]          # 64
    h2_dim = w2_ref.shape[1]          # 32
    mm_dtype = w1_ref.dtype           # bf16 matmul operands, f32 accumulation

    # Packed small params: row 0 = [b1 | b2 | w3_row | pad], row 1 = [b3 | pad].
    p = p_ref[...]                                           # (2, 128) f32
    b1 = p[0:1, 0:h1_dim]                                    # (1, 64)
    b2 = p[0:1, h1_dim:h1_dim + h2_dim]                      # (1, 32)
    w3_row = p[0:1, h1_dim + h2_dim:h1_dim + 2 * h2_dim]     # (1, 32)
    b3 = p[1:2, 0:1]                                         # (1, 1)

    # Fused siamese fc1: one MXU pass over the stacked [2*bt, D] tile, so w1
    # is pushed into the MXU once per grid step instead of twice.
    z = jnp.concatenate(
        [z1_ref[...].astype(mm_dtype), z2_ref[...].astype(mm_dtype)], axis=0)
    h = jnp.dot(z, w1_ref[...], preferred_element_type=jnp.float32)
    h = jnp.maximum(h + b1, 0.0)                             # (2*bt, 64) f32

    diff = jnp.abs(h[:bt] - h[bt:])                          # (bt, 64) f32

    g = jnp.dot(diff.astype(mm_dtype), w2_ref[...],
                preferred_element_type=jnp.float32)
    g = jnp.maximum(g + b2, 0.0)                             # (bt, 32) f32

    # fc3 has N=1: compute it as w3_row @ g^T (NT matmul) so the batch lands
    # on the lane axis -> lane-dense (1, bt) output tile, unmasked stores.
    logits = lax.dot_general(
        w3_row.astype(mm_dtype), g.astype(mm_dtype),
        dimension_numbers=(((1,), (1,)), ((), ())),
        preferred_element_type=jnp.float32)                  # (1, bt)
    o_ref[...] = jax.nn.sigmoid(logits + b3)


def _pack_small_params(b1, b2, w3, b3):
    """Pack b1 (1,64), b2 (1,32), w3 (32,1), b3 (1,1) into one (2,128) f32 op."""
    h1_dim = b1.shape[-1]
    h2_dim = b2.shape[-1]
    width = max(128, _round_up(h1_dim + 2 * h2_dim, 128))
    row0 = jnp.concatenate([
        b1.reshape(-1).astype(jnp.float32),
        b2.reshape(-1).astype(jnp.float32),
        w3.reshape(-1).astype(jnp.float32),
        jnp.zeros((width - h1_dim - 2 * h2_dim,), jnp.float32),
    ])
    row1 = jnp.concatenate([
        b3.reshape(-1).astype(jnp.float32),
        jnp.zeros((width - b3.size,), jnp.float32),
    ])
    return jnp.stack([row0, row1], axis=0)


def siamese_forward(z1, z2, params, *, block_rows=2048):
    """z1, z2: [B, latent_dim] -> [B] sigmoid probabilities (float32)."""
    w1, b1, w2, b2, w3, b3 = params
    B, D = z1.shape

    # Batch tile: multiple of 128 keeps the lane-dense (1, block_rows) output
    # block aligned and the bf16 sublane tiles clean.  2048 rows/step keeps
    # the per-step pipeline overhead small while using ~7 MiB of VMEM
    # (2 inputs x 2 pipeline buffers x 2048x128 f32 + temporaries + weights).
    block_rows = max(128, min(_round_up(block_rows, 128), _round_up(B, 128)))
    padded_b = _round_up(B, block_rows)
    if padded_b != B:
        pad = ((0, padded_b - B), (0, 0))
        z1 = jnp.pad(z1, pad)
        z2 = jnp.pad(z2, pad)

    w1_bf = w1.astype(jnp.bfloat16)
    w2_bf = w2.astype(jnp.bfloat16)
    small = _pack_small_params(b1, b2, w3, b3)

    grid = (padded_b // block_rows,)
    out = pl.pallas_call(
        siamese_kernel,
        out_shape=jax.ShapeDtypeStruct((1, padded_b), jnp.float32),
        grid=grid,
        in_specs=[
            pl.BlockSpec((block_rows, D), lambda i: (i, 0)),   # z1 tile (pipelined)
            pl.BlockSpec((block_rows, D), lambda i: (i, 0)),   # z2 tile (pipelined)
            pl.BlockSpec(w1_bf.shape, lambda i: (0, 0)),       # VMEM-resident
            pl.BlockSpec(w2_bf.shape, lambda i: (0, 0)),       # VMEM-resident
            pl.BlockSpec(small.shape, lambda i: (0, 0)),       # VMEM-resident
        ],
        out_specs=pl.BlockSpec((1, block_rows), lambda i: (0, i)),
        compiler_params=pltpu.CompilerParams(
            dimension_semantics=("parallel",)),
    )(z1, z2, w1_bf, w2_bf, small)

    return out[0, :B]


def init_params(key, latent_dim=128):
    """Deterministic init mimicking PyTorch nn.Linear default (U[-1/sqrt(fan_in), +])."""
    ks = jax.random.split(key, 6)

    def linear(kw, kb, fan_in, fan_out):
        bound = 1.0 / jnp.sqrt(jnp.float32(fan_in))
        # Stored as [in, out] so the kernel computes x @ W.
        w = jax.random.uniform(kw, (fan_in, fan_out), jnp.float32, -bound, bound)
        b = jax.random.uniform(kb, (1, fan_out), jnp.float32, -bound, bound)
        return w, b

    w1, b1 = linear(ks[0], ks[1], latent_dim, 64)
    w2, b2 = linear(ks[2], ks[3], 64, 32)
    w3, b3 = linear(ks[4], ks[5], 32, 1)
    return (w1, b1, w2, b2, w3, b3)


def siamese_reference(z1, z2, params):
    """Pure-JAX reference mirroring the kernel's bf16-operand / f32-accumulate
    matmul numerics on all three linear layers."""
    w1, b1, w2, b2, w3, b3 = params
    bf = lambda x: x.astype(jnp.bfloat16).astype(jnp.float32)
    h1 = jax.nn.relu(bf(z1) @ bf(w1) + b1)
    h2 = jax.nn.relu(bf(z2) @ bf(w1) + b1)
    diff = jnp.abs(h1 - h2)
    h3 = jax.nn.relu(bf(diff) @ bf(w2) + b2)
    return jax.nn.sigmoid(bf(h3) @ bf(w3) + b3)[:, 0]


if __name__ == "__main__":
    key = jax.random.PRNGKey(0)
    k_params, k_z1, k_z2 = jax.random.split(key, 3)

    latent_dim = 128       # module default
    batch = 300            # not a tile multiple: exercises row padding + 3 grid steps

    params = init_params(k_params, latent_dim)
    z1 = jax.random.normal(k_z1, (batch, latent_dim), jnp.float32)
    z2 = jax.random.normal(k_z2, (batch, latent_dim), jnp.float32)

    # Small block_rows so the demo exercises a multi-step (pipelined) grid.
    out = jax.block_until_ready(siamese_forward(z1, z2, params, block_rows=128))
    ref = jax.block_until_ready(siamese_reference(z1, z2, params))

    assert out.shape == (batch,), out.shape
    max_err = float(jnp.max(jnp.abs(out - ref)))
    assert max_err < 2e-3, max_err

    print("KERNEL_OK")
</pallas_src>

<mosaic_0001>
module attributes {stable_mosaic.version = 11 : i64} {
  func.func @siamese_kernel(%arg0: i32, %arg1: memref<128x128xf32, #tpu.memory_space<vmem>>, %arg2: memref<128x128xf32, #tpu.memory_space<vmem>>, %arg3: memref<128x64xbf16, #tpu.memory_space<vmem>>, %arg4: memref<64x32xbf16, #tpu.memory_space<vmem>>, %arg5: memref<2x128xf32, #tpu.memory_space<vmem>>, %arg6: memref<1x128xf32, #tpu.memory_space<vmem>>) attributes {dimension_semantics = [#tpu.dimension_semantics<parallel>], iteration_bounds = array<i64: 3>, scalar_prefetch = 0 : i64, scratch_operands = 0 : i64, tpu.core_type = #tpu.core_type<tc>, window_params = [{transform_indices = @transform_0, window_bounds = array<i64: 128, 128>}, {transform_indices = @transform_1, window_bounds = array<i64: 128, 128>}, {pipeline_mode = #tpu.pipeline_mode<synchronous>, transform_indices = @transform_2, window_bounds = array<i64: 128, 64>}, {pipeline_mode = #tpu.pipeline_mode<synchronous>, transform_indices = @transform_3, window_bounds = array<i64: 64, 32>}, {pipeline_mode = #tpu.pipeline_mode<synchronous>, transform_indices = @transform_4, window_bounds = array<i64: 2, 128>}, {transform_indices = @transform_5, window_bounds = array<i64: 1, 128>}]} {
    %c0 = arith.constant 0 : index
    %c0_0 = arith.constant 0 : index
    %0 = vector.load %arg5[%c0, %c0_0] : memref<2x128xf32, #tpu.memory_space<vmem>>, vector<2x128xf32>
    %1 = vector.extract_strided_slice %0 {offsets = [0, 0], sizes = [1, 64], strides = [1, 1]} : vector<2x128xf32> to vector<1x64xf32>
    %2 = vector.extract_strided_slice %0 {offsets = [0, 64], sizes = [1, 32], strides = [1, 1]} : vector<2x128xf32> to vector<1x32xf32>
    %3 = vector.extract_strided_slice %0 {offsets = [0, 96], sizes = [1, 32], strides = [1, 1]} : vector<2x128xf32> to vector<1x32xf32>
    %4 = vector.extract_strided_slice %0 {offsets = [1, 0], sizes = [1, 1], strides = [1, 1]} : vector<2x128xf32> to vector<1x1xf32>
    %c0_1 = arith.constant 0 : index
    %c0_2 = arith.constant 0 : index
    %5 = vector.load %arg1[%c0_1, %c0_2] : memref<128x128xf32, #tpu.memory_space<vmem>>, vector<128x128xf32>
    %6 = arith.truncf %5 : vector<128x128xf32> to vector<128x128xbf16>
    %c0_3 = arith.constant 0 : index
    %c0_4 = arith.constant 0 : index
    %7 = vector.load %arg2[%c0_3, %c0_4] : memref<128x128xf32, #tpu.memory_space<vmem>>, vector<128x128xf32>
    %8 = arith.truncf %7 : vector<128x128xf32> to vector<128x128xbf16>
    %9 = tpu.concatenate %6, %8 in 0 : vector<128x128xbf16>, vector<128x128xbf16> -> vector<256x128xbf16>
    %c0_5 = arith.constant 0 : index
    %c0_6 = arith.constant 0 : index
    %10 = vector.load %arg3[%c0_5, %c0_6] : memref<128x64xbf16, #tpu.memory_space<vmem>>, vector<128x64xbf16>
    %cst = arith.constant dense<0.000000e+00> : vector<256x64xf32>
    %11 = tpu.matmul %9, %10, %cst {dimension_numbers = #tpu.dot_dimension_numbers<[1], [0], [0], [1], [0, 0, 1, 1], [], []>} : vector<256x128xbf16>, vector<128x64xbf16>, vector<256x64xf32> -> vector<256x64xf32>
    %12 = vector.broadcast %1 : vector<1x64xf32> to vector<256x64xf32>
    %13 = arith.addf %11, %12 : vector<256x64xf32>
    %cst_7 = arith.constant 0.000000e+00 : f32
    %14 = vector.broadcast %cst_7 : f32 to vector<256x64xf32>
    %15 = arith.maximumf %13, %14 : vector<256x64xf32>
    %16 = vector.extract_strided_slice %15 {offsets = [0, 0], sizes = [128, 64], strides = [1, 1]} : vector<256x64xf32> to vector<128x64xf32>
    %17 = vector.extract_strided_slice %15 {offsets = [128, 0], sizes = [128, 64], strides = [1, 1]} : vector<256x64xf32> to vector<128x64xf32>
    %18 = arith.subf %16, %17 : vector<128x64xf32>
    %19 = math.absf %18 : vector<128x64xf32>
    %20 = arith.truncf %19 : vector<128x64xf32> to vector<128x64xbf16>
    %c0_8 = arith.constant 0 : index
    %c0_9 = arith.constant 0 : index
    %21 = vector.load %arg4[%c0_8, %c0_9] : memref<64x32xbf16, #tpu.memory_space<vmem>>, vector<64x32xbf16>
    %cst_10 = arith.constant dense<0.000000e+00> : vector<128x32xf32>
    %22 = tpu.matmul %20, %21, %cst_10 {dimension_numbers = #tpu.dot_dimension_numbers<[1], [0], [0], [1], [0, 0, 1, 1], [], []>} : vector<128x64xbf16>, vector<64x32xbf16>, vector<128x32xf32> -> vector<128x32xf32>
    %23 = vector.broadcast %2 : vector<1x32xf32> to vector<128x32xf32>
    %24 = arith.addf %22, %23 : vector<128x32xf32>
    %cst_11 = arith.constant 0.000000e+00 : f32
    %25 = vector.broadcast %cst_11 : f32 to vector<128x32xf32>
    %26 = arith.maximumf %24, %25 : vector<128x32xf32>
    %27 = arith.truncf %3 : vector<1x32xf32> to vector<1x32xbf16>
    %28 = arith.truncf %26 : vector<128x32xf32> to vector<128x32xbf16>
    %cst_12 = arith.constant dense<0.000000e+00> : vector<1x128xf32>
    %29 = tpu.matmul %27, %28, %cst_12 {dimension_numbers = #tpu.dot_dimension_numbers<[1], [1], [0], [0], [0, 0, 1, 0], [], []>} : vector<1x32xbf16>, vector<128x32xbf16>, vector<1x128xf32> -> vector<1x128xf32>
    %30 = vector.broadcast %4 : vector<1x1xf32> to vector<1x128xf32>
    %31 = arith.addf %29, %30 : vector<1x128xf32>
    %32 = arith.negf %31 : vector<1x128xf32>
    %33 = math.exp %32 : vector<1x128xf32>
    %cst_13 = arith.constant 1.000000e+00 : f32
    %34 = vector.broadcast %cst_13 : f32 to vector<1x128xf32>
    %35 = arith.addf %34, %33 : vector<1x128xf32>
    %36 = arith.divf %34, %35 : vector<1x128xf32>
    %c0_14 = arith.constant 0 : index
    %c0_15 = arith.constant 0 : index
    %37 = vector.load %arg6[%c0_14, %c0_15] : memref<1x128xf32, #tpu.memory_space<vmem>>, vector<1x128xf32>
    tpu.vector_store %arg6[%c0_14, %c0_15], %36 {strides = array<i32>} : memref<1x128xf32, #tpu.memory_space<vmem>>, vector<1x128xf32>,
    return
  }
  func.func @transform_0(%arg0: i32) -> (i32, i32) {
    %c0_i32 = arith.constant 0 : i32
    %c0_i32_0 = arith.constant 0 : i32
    return %arg0, %c0_i32 : i32, i32
  }
  func.func @transform_1(%arg0: i32) -> (i32, i32) {
    %c0_i32 = arith.constant 0 : i32
    %c0_i32_0 = arith.constant 0 : i32
    return %arg0, %c0_i32 : i32, i32
  }
  func.func @transform_2(%arg0: i32) -> (i32, i32) {
    %c0_i32 = arith.constant 0 : i32
    %c0_i32_0 = arith.constant 0 : i32
    %c0_i32_1 = arith.constant 0 : i32
    return %c0_i32, %c0_i32_0 : i32, i32
  }
  func.func @transform_3(%arg0: i32) -> (i32, i32) {
    %c0_i32 = arith.constant 0 : i32
    %c0_i32_0 = arith.constant 0 : i32
    %c0_i32_1 = arith.constant 0 : i32
    return %c0_i32, %c0_i32_0 : i32, i32
  }
  func.func @transform_4(%arg0: i32) -> (i32, i32) {
    %c0_i32 = arith.constant 0 : i32
    %c0_i32_0 = arith.constant 0 : i32
    %c0_i32_1 = arith.constant 0 : i32
    return %c0_i32, %c0_i32_0 : i32, i32
  }
  func.func @transform_5(%arg0: i32) -> (i32, i32) {
    %c0_i32 = arith.constant 0 : i32
    %c0_i32_0 = arith.constant 0 : i32
    return %c0_i32, %arg0 : i32, i32
  }
}

</mosaic_0001>

<bundles_post_ra>
// kernel: tpu_custom_call.1
= control target key start
LH: loop header
LB: loop body
LE: loop exit
PB: predicated region body
PF: predicated region fallthrough
CT: control target
= control target key end

     0   :  { %10 = vsyncpa [#allocation3], 0  ;;  %s1818_s0 = inlined_call_operand.hbm [shape: f32[384,128], index: 0, kind: input, shape index: {}]   ;;  %s1819_s1 = inlined_call_operand.hbm [shape: f32[384,128], index: 1, kind: input, shape index: {}]   ;;  %s1820_s2 = inlined_call_operand.vmem [shape: bf16[128,64], index: 2, kind: input, shape index: {}]   ;;  %s1821_s3 = inlined_call_operand.vmem [shape: bf16[64,32], index: 3, kind: input, shape index: {}]   ;;  %s1822_s4 = inlined_call_operand.vmem [shape: f32[2,128], index: 4, kind: input, shape index: {}]   ;;  %s1823_s5 = inlined_call_operand.hbm [shape: f32[1,384], index: 5, kind: output, shape index: {}]  }
   0x1   :  { %12 = vsyncpa [#allocation3 + $0x1], 0 }
   0x2   :  { %13 = vsyncpa [#allocation6], 0 }
   0x3   :  { %15 = vsyncpa [#allocation6 + $0x1], 0 }
   0x4   :  { %16 = vsyncpa [#allocation4], 0 }
   0x5   :  { %18 = vsyncpa [#allocation4 + $0x1], 0  ;;  %s1422_s18 = smov 0   ;;  %s1424_s19 = smov 0  }
   0x6   :  { %s1426_s20 = smov 0   ;;  %s1428_s21 = smov 0  }
   0x7 LB: > { %s1443_s22 = sadd.s32 4294967295, %s1380_s21   ;;  %s1004_s23 = sadd.s32 4294967294, %s1380_s21   ;;  %s1380_s21 = sphi %s1428_s21, %s1840_s21   ;;  %s1376_s20 = sphi %s1426_s20, %s1839_s20   ;;  %s1372_s19 = sphi %s1424_s19, %s1838_s19   ;;  %s1368_s18 = sphi %s1422_s18, %s1837_s18  }
   0x8   : > { %s1447_s24 = sadd.s32 1, %s1380_s21   ;;  %s31_s25 = sadd.s32 1, %s1376_s20 }
   0x9   : > { %s28_s26 = ssub.s32 %s1380_s21, %s1447_s24  ;;  %p38_p0 = scmp.ne.s32.totalorder %s1376_s20, %s1372_s19 }
   0xa   : > { %p29_p1 = scmp.eq.s32.totalorder %s28_s26, 0  ;;  %p39_p2 = scmp.eq.s32.totalorder %s1380_s21, 0 }
   0xb   : > { %p44_p3 = scmp.ne.s32.totalorder %s1372_s19, %s1368_s18  ;;  %p45_p4 = scmp.eq.s32.totalorder %s1443_s22, 0 }
   0xc   : > { %s1459_s27 = scalar_select %p29_p1, %s1376_s20, %s31_s25  }
   0xd   : > { %p1461_p5 = por %p39_p2, %p38_p0  ;;  %p1465_p6 = por %p45_p4, %p44_p3 }
   0xe   : > { %p157_p7 = scmp.eq.s32.totalorder %s1443_s22, 2  ;;  %p163_p8 = scmp.eq.s32.totalorder %s1004_s23, 2 }
   0xf   : > { %s1828_s29 = scalar_select %p1465_p6, 1, 0 }
  0x10   : > { %p1197_p9 = scmp.lt.s32.totalorder %s1380_s21, 3  ;;  %p1471_p10 = por %p157_p7, %p38_p0 }
  0x11   : > { %p1475_p11 = por %p163_p8, %p44_p3  ;;  %s1480_s7 = sand.u32 1, %s1376_s20  }
  0x12   : > { %s1829_s30 = scalar_select %p1471_p10, 1, 0 }
  0x13   : > { %s1830_s6 = scalar_select %p1475_p11, 1, 0 }
  0x14   : > { %s1041_s8 = sshll.u32 %s1380_s21, 11  ;;  %s1007_s9 = sshll.u32 %s1480_s7, 7 }
  0x15   : > { %s1489_s12 = scalar_lea.hbm %s1818_s0, %s1041_s8  ;;  %s196_s13 = scalar_lea.vmem [#allocation2], %s1007_s9 }
  0x16   : > { %s203_s14 = sshll.u32 %s196_s13, 4  ;;  %p1495_p12 = pnand %p1197_p9, %p1461_p5  ;;  %s1499_s14 = int_to_ptr.vmem [resolvable:$true] %s203_s14 }
  0x17   : > { %s193_s16 = scalar_lea.sflag [#allocation3], %s1480_s7  ;;  %s1256_s17 = scalar_lea.hbm %s1489_s12, 2048 }
  0x18   : > { %p1257_p13 = scmp.ne.s32.totalorder %s1489_s12, %s1256_s17  ;;  %p1258_p0 = pneg %p1495_p12 }
  0x19   : > { %s1261_s26 = scalar_lea.hbm %s1818_s0, 6144  ;;  %p1262_p3 = scmp.lt.s32.totalorder %s1489_s12, %s1818_s0 }
  0x1a   : > { %p1259_p1 = pnand %p1258_p0, %p1257_p13  ;;  %p1263_p4 = scmp.lt.s32.totalorder %s1261_s26, %s1256_s17 }
  0x1c   : > { %p1260_p2 = pneg %p1259_p1  ;;  %p1264_p5 = por %p1263_p4, %p1262_p3 }
  0x1e   : > { %p1265_p7 = pnand %p1264_p5, %p1260_p2 }
  0x20   : > { %1268 = shalt.err (!%p1265_p7)
}
  0x21   : > { %s1269_s11 = scalar_lea.vmem %s1499_s14, 2048  ;;  %s1382_s13 = smov [#allocation2]  }
  0x22   : > { %p1270_p8 = scmp.ne.s32.totalorder %s1499_s14, %s1269_s11  ;;  %s1274_s23 = sshll.u32 %s1382_s13, 4  ;;  %s1275_s23 = int_to_ptr.vmem [resolvable:$false] %s1274_s23 }
  0x23   : > { %s1276_s25 = scalar_lea.vmem %s1275_s23, 4096  ;;  %p1277_p1 = scmp.lt.s32.totalorder %s1499_s14, %s1275_s23 }
  0x24   : > { %p1272_p9 = pnand %p1270_p8, %p1258_p0  ;;  %p1278_p11 = scmp.lt.s32.totalorder %s1276_s25, %s1269_s11 }
  0x26   : > { %p1273_p13 = pneg %p1272_p9  ;;  %p1279_p10 = por %p1278_p11, %p1277_p1 }
  0x28   : > { %p1280_p3 = pnand %p1279_p10, %p1273_p13 }
  0x2a   : > { %1283 = shalt.err (!%p1280_p3)
}
  0x2b   : > { %s1825_s17 = smov 128   ;;  %s1384_s26 = smov 8  }
  0x2c   : > { %1189 = dma.hbm_to_vmem [thread:$0]  (!%p1495_p12), %s1489_s12, 2048, %s1499_s14, %s193_s16, %s1825_s17, %s1825_s17, %s1384_s26  }
  0x2d   : > { %p1013_p10 = scmp.ge.s32.totalorder %s1380_s21, 1  ;;  %p232_p11 = scmp.lt.s32.totalorder %s1380_s21, 4 }
  0x2e   : > { %s1542_s13 = scalar_lea.hbm %s1819_s1, %s1041_s8  ;;  %s217_s23 = scalar_lea.vmem [#allocation5], %s1007_s9 }
  0x2f   : > { %p1533_p2 = pnand %p1013_p10, %p232_p11  ;;  %s224_s25 = sshll.u32 %s217_s23, 4  ;;  %s1546_s25 = int_to_ptr.vmem [resolvable:$true] %s224_s25 }
  0x30   : > { %s214_s12 = scalar_lea.sflag [#allocation6], %s1480_s7  ;;  %s1284_s14 = scalar_lea.hbm %s1542_s13, 2048 }
  0x31   : > { %p1285_p4 = scmp.ne.s32.totalorder %s1542_s13, %s1284_s14  ;;  %s1289_s8 = scalar_lea.hbm %s1819_s1, 6144 }
  0x32   : > { %p1290_p8 = scmp.lt.s32.totalorder %s1542_s13, %s1819_s1  ;;  %p1291_p9 = scmp.lt.s32.totalorder %s1289_s8, %s1284_s14 }
  0x33   : > { %p1287_p5 = pnand %p1285_p4, %p1258_p0 }
  0x34   : > { %p1292_p13 = por %p1291_p9, %p1290_p8 }
  0x35   : > { %p1288_p7 = pneg %p1287_p5 }
  0x37   : > { %p1293_p1 = pnand %p1292_p13, %p1288_p7 }
  0x39   : > { %1296 = shalt.err (!%p1293_p1)
}
  0x3a   : > { %s1297_s7 = scalar_lea.vmem %s1546_s25, 2048  ;;  %s1385_s9 = smov [#allocation5]  }
  0x3b   : > { %p1298_p3 = scmp.ne.s32.totalorder %s1546_s25, %s1297_s7  ;;  %s1302_s17 = sshll.u32 %s1385_s9, 4  ;;  %s1303_s17 = int_to_ptr.vmem [resolvable:$false] %s1302_s17 }
  0x3c   : > { %s1304_s23 = scalar_lea.vmem %s1303_s17, 4096  ;;  %p1305_p4 = scmp.lt.s32.totalorder %s1546_s25, %s1303_s17 }
  0x3d   : > { %p1300_p10 = pnand %p1298_p3, %p1258_p0  ;;  %p1306_p5 = scmp.lt.s32.totalorder %s1304_s23, %s1297_s7 }
  0x3f   : > { %p1301_p11 = pneg %p1300_p10  ;;  %p1307_p6 = por %p1306_p5, %p1305_p4 }
  0x41   : > { %p1308_p8 = pnand %p1307_p6, %p1301_p11 }
  0x43   : > { %1311 = shalt.err (!%p1308_p8)
}
  0x44   : > { %s1833_s14 = smov 128   ;;  %236 = sbr.rel (%p1533_p2) target bundleno = 882 (0x372), region = 40 }
  0x45   : > { %1192 = dma.hbm_to_vmem [thread:$0]  (!%p1495_p12), %s1542_s13, 2048, %s1546_s25, %s214_s12, %s1833_s14, %s1833_s14, %s1384_s26  }
  0x46   : > { %s1577_s16 = sand.u32 (!%p1533_p2), 1, %s1372_s19   ;;  %p1834_p6 = scmp.ne.s32.totalorder (!%p1533_p2), %s1828_s29, 0 }
  0x47   : > { %s1014_s8 = sshll.u32 (!%p1533_p2), %s1577_s16, 7  ;;  %s239_s10 = scalar_lea.sflag (!%p1533_p2), [#allocation3], %s1577_s16 }
  0x48   : > { %s1581_s11 = scalar_lea.vmem (!%p1533_p2), [#allocation2], %s1014_s8 }
  0x49   : > { %1355 = dma.done.wait (%p1834_p6), %s239_s10, 2048  }
  0x4a   : > { %1357 = vsyncadd (%p1834_p6), %s239_s10, 4294965248  ;;  %s248_s15 = scalar_lea.sflag [#allocation6], %s1577_s16  ;;  %s1588_s26 = scalar_lea.vmem [#allocation5], %s1014_s8 }
  0x4b   : > { %1359 = dma.done.wait (%p1834_p6), %s248_s15, 2048  }
  0x4c   : > { %1361 = vsyncadd (%p1834_p6), %s248_s15, 4294965248  ;;  %v1240_v0 = vld [vmem:[%s1820_s2 + $0x38] sm:$0xff]   ;;  %v1241_v1 = vld [vmem:[%s1820_s2 + $0x30] sm:$0xff]   ;;  %v350_v60 = vlaneseq  ;;  %s1386_s10 = smov 64   ;;  %s1387_s15 = smov 32   ;;  %vm671_vm0 = vcmask 523264  }
  0x4d   : > { %1088 = vmatprep.subr.bf16.mxu0 %v1240_v0  ;;  %v1242_v2 = vld [vmem:[%s1820_s2 + $0x28] sm:$0xff]   ;;  %v1243_v3 = vld [vmem:[%s1820_s2 + $0x20] sm:$0xff]   ;;  %v1244_v7 = vld [vmem:[%s1820_s2 + $0x18] sm:$0xff]   ;;  %vm1389_vm1 = vmmov 0   ;;  %vm827_vm2 = vcmask 261120   ;;  %s1038_s28 = sshll.u32 %s1443_s22, 4 }
  0x4e   : > { %1089 = vmatpush3.bf16.msra.mxu0 %v1240_v0  ;;  %v286_v4 = vld [vmem:[%s1581_s11] sm:$0xff]  ;;  %v287_v5 = vld [vmem:[%s1581_s11 + $0x8] sm:$0xff]  ;;  %v1245_v8 = vld [vmem:[%s1820_s2 + $0x10] sm:$0xff]   ;;  %v351_v61 = vshrl.u32 %v350_v60, 7  ;;  %s281_s13 = scalar_lea.vmem [#allocation7], %s1577_s16  ;;  %s1782_s7 = scalar_lea.hbm %s1823_s5, %s1038_s28 }
  0x4f   : > { %1090 = vmatprep.subr.bf16.mxu0 %v1241_v1  ;;  %v302_v6 = vpack.c.bf16 %v287_v5, %v286_v4  ;;  %v1246_v9 = vld [vmem:[%s1820_s2 + $0x8] sm:$0xff]   ;;  %v1247_v10 = vld [vmem:[%s1820_s2] sm:$0xff]   ;;  %v288_v11 = vld [vmem:[%s1581_s11 + $0x10] sm:$0xff]  ;;  %s915_s25 = sshll.u32 %s281_s13, 4  ;;  %s903_s9 = scalar_lea.sflag [#allocation4], %s1577_s16  ;;  %s916_s25 = int_to_ptr.vmem [resolvable:$true] %s915_s25 }
  0x50   : > { %v289_v12 = vld [vmem:[%s1581_s11 + $0x18] sm:$0xff]  ;;  %v290_v13 = vld [vmem:[%s1581_s11 + $0x20] sm:$0xff]  ;;  %v291_v14 = vld [vmem:[%s1581_s11 + $0x28] sm:$0xff]  ;;  %v352_v62 = vsub.s32 0, %v351_v61  ;;  %s1312_s29 = scalar_lea.vmem %s916_s25, 16  ;;  %p1835_p0 = scmp.ne.s32.totalorder %s1829_s30, 0 }
  0x51   : > { %1104 = vmatprep.mubr.bf16.mxu0 %v302_v6  ;;  %v303_v15 = vpack.c.bf16 %v289_v12, %v288_v11  ;;  %v304_v16 = vpack.c.bf16 %v291_v14, %v290_v13  ;;  %v292_v17 = vld [vmem:[%s1581_s11 + $0x30] sm:$0xff]  ;;  %v293_v18 = vld [vmem:[%s1581_s11 + $0x38] sm:$0xff]  ;;  %v294_v19 = vld [vmem:[%s1581_s11 + $0x40] sm:$0xff]  ;;  %p1313_p12 = scmp.ne.s32.totalorder %s916_s25, %s1312_s29  ;;  %s1391_s17 = smov [#allocation7]  }
  0x52   : > { %1091 = vmatpush3.bf16.msra.mxu0 %v1241_v1  ;;  %v295_v20 = vld [vmem:[%s1581_s11 + $0x48] sm:$0xff]  ;;  %v305_v21 = vpack.c.bf16 %v293_v18, %v292_v17  ;;  %v296_v23 = vld [vmem:[%s1581_s11 + $0x50] sm:$0xff]  ;;  %v297_v24 = vld [vmem:[%s1581_s11 + $0x58] sm:$0xff] }
  0x53   : > { %1092 = vmatprep.subr.bf16.mxu0 %v1242_v2  ;;  %v306_v22 = vpack.c.bf16 %v295_v20, %v294_v19  ;;  %v298_v25 = vld [vmem:[%s1581_s11 + $0x60] sm:$0xff]  ;;  %v299_v26 = vld [vmem:[%s1581_s11 + $0x68] sm:$0xff]  ;;  %v307_v27 = vpack.c.bf16 %v297_v24, %v296_v23  ;;  %v300_v29 = vld [vmem:[%s1581_s11 + $0x70] sm:$0xff]  ;;  %p1314_p2 = pnand %p1313_p12, %p1835_p0 }
  0x54   : > { %v308_v28 = vpack.c.bf16 %v299_v26, %v298_v25  ;;  %v301_v30 = vld [vmem:[%s1581_s11 + $0x78] sm:$0xff]  ;;  %v310_v31 = vld [vmem:[%s1588_s26] sm:$0xff]  ;;  %v311_v32 = vld [vmem:[%s1588_s26 + $0x8] sm:$0xff] }
  0x55   : > { %v309_v33 = vpack.c.bf16 %v301_v30, %v300_v29  ;;  %v326_v34 = vpack.c.bf16 %v311_v32, %v310_v31  ;;  %v312_v35 = vld [vmem:[%s1588_s26 + $0x10] sm:$0xff]  ;;  %v313_v36 = vld [vmem:[%s1588_s26 + $0x18] sm:$0xff]  ;;  %v314_v37 = vld [vmem:[%s1588_s26 + $0x20] sm:$0xff]  ;;  %p1315_p7 = pneg %p1314_p2 }
  0x56   : > { %1093 = vmatpush3.bf16.msra.mxu0 %v1242_v2  ;;  %v315_v38 = vld [vmem:[%s1588_s26 + $0x28] sm:$0xff]  ;;  %v327_v39 = vpack.c.bf16 %v313_v36, %v312_v35  ;;  %v316_v41 = vld [vmem:[%s1588_s26 + $0x30] sm:$0xff]  ;;  %v317_v42 = vld [vmem:[%s1588_s26 + $0x38] sm:$0xff] }
  0x57   : > { %1094 = vmatprep.subr.bf16.mxu0 %v1243_v3  ;;  %v328_v40 = vpack.c.bf16 %v315_v38, %v314_v37  ;;  %v318_v43 = vld [vmem:[%s1588_s26 + $0x40] sm:$0xff]  ;;  %v319_v44 = vld [vmem:[%s1588_s26 + $0x48] sm:$0xff]  ;;  %v329_v45 = vpack.c.bf16 %v317_v42, %v316_v41  ;;  %v320_v47 = vld [vmem:[%s1588_s26 + $0x50] sm:$0xff] }
  0x58   : > { %v330_v46 = vpack.c.bf16 %v319_v44, %v318_v43  ;;  %v321_v48 = vld [vmem:[%s1588_s26 + $0x58] sm:$0xff]  ;;  %v322_v49 = vld [vmem:[%s1588_s26 + $0x60] sm:$0xff]  ;;  %v323_v50 = vld [vmem:[%s1588_s26 + $0x68] sm:$0xff] }
  0x59   : > { %v331_v51 = vpack.c.bf16 %v321_v48, %v320_v47  ;;  %v332_v52 = vpack.c.bf16 %v323_v50, %v322_v49  ;;  %v324_v53 = vld [vmem:[%s1588_s26 + $0x70] sm:$0xff]  ;;  %v325_v54 = vld [vmem:[%s1588_s26 + $0x78] sm:$0xff]  ;;  %v1250_v58 = vld [vmem:[%s1821_s3 + $0x8] sm:$0xff]   ;;  %s1316_s26 = sshll.u32 %s1391_s17, 4  ;;  %s1317_s26 = int_to_ptr.vmem [resolvable:$false] %s1316_s26 }
  0x5a   : > { %1095 = vmatpush3.bf16.msra.mxu0 %v1243_v3  ;;  %v333_v55 = vpack.c.bf16 %v325_v54, %v324_v53  ;;  %v1248_v56 = vld [vmem:[%s1821_s3 + $0x18] sm:$0xff]   ;;  %v1249_v57 = vld [vmem:[%s1821_s3 + $0x10] sm:$0xff]   ;;  %v1251_v59 = vld [vmem:[%s1821_s3] sm:$0xff]   ;;  %s1318_s22 = scalar_lea.vmem %s1317_s26, 32  ;;  %p1319_p9 = scmp.lt.s32.totalorder %s916_s25, %s1317_s26 }
  0x5b   : > { %1096 = vmatprep.subr.bf16.mxu0 %v1244_v7  ;;  %1136 = vmatprep.subr.bf16.mxu1 %v1248_v56  ;;  %v1665_v63 = vld [vmem:[%s1822_s4] sm:$0x3]  ;;  %p1320_p13 = scmp.lt.s32.totalorder %s1318_s22, %s1312_s29 }
  0x5c   : > { %1137 = vmatpush3.bf16.msra.mxu1 %v1248_v56  ;;  %v1668_v0 = vrot.slane %v1665_v63, %v352_v62  ;;  %v809_v1 = vpack.c.bf16 %v1665_v63, %v1665_v63 }
  0x5d   : > { %1138 = vmatprep.subr.bf16.mxu1 %v1249_v57  ;;  %p1321_p1 = por %p1320_p13, %p1319_p9 }
  0x5e   : > { %1097 = vmatpush3.bf16.msra.mxu0 %v1244_v7  ;;  %668 = vrot.lane.b32.xlu0 %v1668_v0, %s1386_s10 }
  0x5f   : > { %1098 = vmatprep.subr.bf16.mxu0 %v1245_v8  ;;  %p1322_p3 = pnand %p1321_p1, %p1315_p7 }
  0x60   : > { %1139 = vmatpush3.bf16.msra.mxu1 %v1249_v57 }
  0x61   : > { %1140 = vmatprep.subr.bf16.mxu1 %v1250_v58 }
  0x62   : > { %1099 = vmatpush3.bf16.msra.mxu0 %v1245_v8  ;;  %823 = vrot.lane.b32.xlu0 %v809_v1, %s1387_s15 }
  0x63   : > { %1100 = vmatprep.subr.bf16.mxu0 %v1246_v9 }
  0x64   : > { %1141 = vmatpush3.bf16.msra.mxu1 %v1250_v58 }
  0x65   : > { %1142 = vmatprep.subr.bf16.mxu1 %v1251_v59 }
  0x66   : > { %1101 = vmatpush3.bf16.msra.mxu0 %v1246_v9 }
  0x67   : > { %1102 = vmatprep.subr.bf16.mxu0 %v1247_v10 }
  0x68   : > { %1143 = vmatpush3.bf16.msra.mxu1 %v1251_v59 }
  0x6a   : > { %1103 = vmatpush3.bf16.msra.mxu0 %v1247_v10 }
  0x6d   : > { %1105 = vmatmul.mubr.bf16.vlgmr.msra.gmra.mxu0 %v303_v15 }
  0x6e   : > { %1108 = vmatprep.mubr.bf16.mxu0 %v304_v16 }
  0x75   : > { %1109 = vmatmul.mubr.bf16.gmra.mxu0 %v305_v21 }
  0x76   : > { %1112 = vmatprep.mubr.bf16.mxu0 %v306_v22 }
  0x7d   : > { %1113 = vmatmul.mubr.bf16.gmra.mxu0 %v307_v27 }
  0x7e   : > { %1116 = vmatprep.mubr.bf16.mxu0 %v308_v28 }
  0x85   : > { %1117 = vmatmul.mubr.bf16.gmra.mxu0 %v309_v33 }
  0x86   : > { %1120 = vmatprep.mubr.bf16.mxu0 %v326_v34 }
  0x8d   : > { %1121 = vmatmul.mubr.bf16.gmra.mxu0 %v327_v39 }
  0x8e   : > { %1124 = vmatprep.mubr.bf16.mxu0 %v328_v40 }
  0x95   : > { %1125 = vmatmul.mubr.bf16.gmra.mxu0 %v329_v45 }
  0x96   : > { %1128 = vmatprep.mubr.bf16.mxu0 %v330_v46 }
  0x9d   : > { %1129 = vmatmul.mubr.bf16.gmra.mxu0 %v331_v51 }
  0x9e   : > { %1132 = vmatprep.mubr.bf16.mxu0 %v332_v52 }
  0xa5   : > { %1133 = vmatmul.mubr.bf16.gmra.mxu0 %v333_v55 }
 0x12d   : > { %v1106_v2 = vpop.f32.mrf.mxu0 }
 0x12e   : > { %v445_v25 = vadd.f32 %v1106_v2, %v1668_v0 }
 0x12f   : > { %v436_v3 = vpop.f32.mrf.mxu0 }
 0x130   : > { %v437_v23 = vadd.f32 %v436_v3, %v1668_v0  ;;  %v565_v36 = vmax.f32 %v445_v25, 0.0 }
 0x131   : > { %v1107_v4 = vpop.f32.mrf.mxu0 }
 0x132   : > { %v448_v20 = vadd.f32 %v1107_v4, %v1668_v0  ;;  %v563_v34 = vmax.f32 %v437_v23, 0.0 }
 0x133   : > { %v439_v5 = vpop.f32.mrf.mxu0 }
 0x134   : > { %v440_v26 = vadd.f32 %v439_v5, %v1668_v0  ;;  %v566_v30 = vmax.f32 %v448_v20, 0.0 }
 0x135   : > { %v1110_v6 = vpop.f32.mrf.mxu0 }
 0x136   : > { %v564_v37 = vmax.f32 %v440_v26, 0.0  ;;  %v461_v48 = vadd.f32 %v1110_v6, %v1668_v0 }
 0x137   : > { %v452_v7 = vpop.f32.mrf.mxu0 }
 0x138   : > { %v453_v40 = vadd.f32 %v452_v7, %v1668_v0  ;;  %v569_v1 = vmax.f32 %v461_v48, 0.0 }
 0x139   : > { %v1111_v8 = vpop.f32.mrf.mxu0 }
 0x13a   : > { %v464_v41 = vadd.f32 %v1111_v8, %v1668_v0  ;;  %v567_v54 = vmax.f32 %v453_v40, 0.0 }
 0x13b   : > { %v455_v9 = vpop.f32.mrf.mxu0 }
 0x13c   : > { %v456_v50 = vadd.f32 %v455_v9, %v1668_v0  ;;  %v570_v55 = vmax.f32 %v464_v41, 0.0 }
 0x13d   : > { %v1673_v10 = vpop.f32.mrf.mxu0 }
 0x13e   : > { %v568_v5 = vmax.f32 %v456_v50, 0.0  ;;  %v477_v23 = vadd.f32 %v1673_v10, %v1668_v0 }
 0x13f   : > { %v468_v11 = vpop.f32.mrf.mxu0 }
 0x140   : > { %v469_v9 = vadd.f32 %v468_v11, %v1668_v0 }
 0x141   : > { %v1675_v12 = vpop.f32.mrf.mxu0 }
 0x143   : > { %v1677_v13 = vpop.f32.mrf.mxu0 }
 0x144   : > { %v472_v11 = vadd.f32 %v1677_v13, %v1668_v0 }
 0x145   : > { %v1679_v14 = vpop.f32.mrf.mxu0 }
 0x147   : > { %v1681_v15 = vpop.f32.mrf.mxu0 }
 0x148   : > { %v485_v50 = vadd.f32 %v1681_v15, %v1668_v0 }
 0x149   : > { %v1683_v16 = vpop.f32.mrf.mxu0 }
 0x14b   : > { %v1685_v17 = vpop.f32.mrf.mxu0 }
 0x14d   : > { %v1122_v18 = vpop.f32.mrf.mxu0 }
 0x14e   : > { %v509_v21 = vadd.f32 %v1122_v18, %v1668_v0 }
 0x14f   : > { %v500_v19 = vpop.f32.mrf.mxu0 }
 0x150   : > { %v501_v22 = vadd.f32 %v500_v19, %v1668_v0  ;;  %v581_v31 = vmax.f32 %v509_v21, 0.0 }
 0x151   : > { %v1123_v24 = vpop.f32.mrf.mxu0 }
 0x152   : > { %v512_v27 = vadd.f32 %v1123_v24, %v1668_v0  ;;  %v579_v28 = vmax.f32 %v501_v22, 0.0  ;;  %v597_v44 = vsub.f32 %v565_v36, %v581_v31  ;;  %v480_v24 = vadd.f32 %v1675_v12, %v1668_v0 }
 0x153   : > { %v503_v29 = vpop.f32.mrf.mxu0  ;;  %v573_v36 = vmax.f32 %v477_v23, 0.0  ;;  %v1737_v23 = vpop.permute.xlu0 %668 }
 0x154   : > { %v582_v32 = vmax.f32 %v512_v27, 0.0  ;;  %v504_v33 = vadd.f32 %v503_v29, %v1668_v0  ;;  %v595_v42 = vsub.f32 %v563_v34, %v579_v28  ;;  %v613_v59 = vand.u32 2147483647, %v597_v44 }
 0x155   : > { %v1126_v35 = vpop.f32.mrf.mxu0 }
 0x156   : > { %v598_v38 = vsub.f32 %v566_v30, %v582_v32  ;;  %v580_v39 = vmax.f32 %v504_v33, 0.0  ;;  %v525_v46 = vadd.f32 %v1126_v35, %v1668_v0  ;;  %v611_v57 = vand.u32 2147483647, %v595_v42 }
 0x157   : > { %v516_v43 = vpop.f32.mrf.mxu0  ;;  %v571_v30 = vmax.f32 %v469_v9, 0.0  ;;  %v496_v42 = vadd.f32 %v1683_v16, %v1668_v0 }
 0x158   : > { %v596_v45 = vsub.f32 %v564_v37, %v580_v39  ;;  %v517_v47 = vadd.f32 %v516_v43, %v1668_v0  ;;  %v614_v51 = vand.u32 2147483647, %v598_v38  ;;  %v585_v60 = vmax.f32 %v525_v46, 0.0 }
 0x159   : > { %v1127_v49 = vpop.f32.mrf.mxu0  ;;  %v574_v37 = vmax.f32 %v480_v24, 0.0  ;;  %v572_v39 = vmax.f32 %v472_v11, 0.0 }
 0x15a   : > { %v583_v52 = vmax.f32 %v517_v47, 0.0  ;;  %v528_v53 = vadd.f32 %v1127_v49, %v1668_v0  ;;  %v612_v58 = vand.u32 2147483647, %v596_v45  ;;  %v628_v6 = vpack.c.bf16 %v614_v51, %v613_v59 }
 0x15b   : > { %v519_v56 = vpop.f32.mrf.mxu0  ;;  %v601_v19 = vsub.f32 %v569_v1, %v585_v60  ;;  %v493_v49 = vadd.f32 %v1679_v14, %v1668_v0  ;;  %v575_v14 = vmax.f32 %v485_v50, 0.0 }
 0x15c   : > { %v586_v61 = vmax.f32 %v528_v53, 0.0  ;;  %v520_v62 = vadd.f32 %v519_v56, %v1668_v0  ;;  %v599_v2 = vsub.f32 %v567_v54, %v583_v52  ;;  %v627_v4 = vpack.c.bf16 %v612_v58, %v611_v57 }
 0x15d   : > { %v1130_v3 = vpop.f32.mrf.mxu0  ;;  %v617_v33 = vand.u32 2147483647, %v601_v19  ;;  %v488_v56 = vadd.f32 %v1685_v17, %v1668_v0  ;;  %v577_v15 = vmax.f32 %v493_v49, 0.0 }
 0x15e   : > { %v602_v7 = vsub.f32 %v570_v55, %v586_v61  ;;  %v584_v8 = vmax.f32 %v520_v62, 0.0  ;;  %1144 = vmatprep.mubr.msk.bf16.mxu1 %vm671_vm0, %v627_v4  ;;  %v541_v21 = vadd.f32 %v1130_v3, %v1668_v0  ;;  %v615_v25 = vand.u32 2147483647, %v599_v2 }
 0x15f   : > { %v532_v18 = vpop.f32.mrf.mxu0  ;;  %1145 = vmatmul.mubr.msk.bf16.vlgmr.msra.gmra.mxu1 %vm671_vm0, %v628_v6  ;;  %v578_v55 = vmax.f32 %v496_v42, 0.0  ;;  %v576_v4 = vmax.f32 %v488_v56, 0.0 }
 0x160   : > { %v600_v20 = vsub.f32 %v568_v5, %v584_v8  ;;  %v533_v22 = vadd.f32 %v532_v18, %v1668_v0  ;;  %v618_v27 = vand.u32 2147483647, %v602_v7  ;;  %v589_v35 = vmax.f32 %v541_v21, 0.0 }
 0x161   : > { %v1131_v26 = vpop.f32.mrf.mxu0 }
 0x162   : > { %v616_v28 = vand.u32 2147483647, %v600_v20  ;;  %v587_v29 = vmax.f32 %v533_v22, 0.0  ;;  %v544_v31 = vadd.f32 %v1131_v26, %v1668_v0  ;;  %v630_v40 = vpack.c.bf16 %v618_v27, %v617_v33 }
 0x163   : > { %v535_v32 = vpop.f32.mrf.mxu0  ;;  %v605_v45 = vsub.f32 %v573_v36, %v589_v35  ;;  %v1390_v22 = vmov 0  }
 0x164   : > { %v629_v34 = vpack.c.bf16 %v616_v28, %v615_v25  ;;  %v536_v10 = vadd.f32 %v535_v32, %v1668_v0  ;;  %v590_v12 = vmax.f32 %v544_v31, 0.0  ;;  %v603_v41 = vsub.f32 %v571_v30, %v587_v29  ;;  %1238 = vset.pattern.permute.xlu1 %v1390_v22  ;;  %1239 = vset.pattern.permute.xlu0 %v1390_v22 }
 0x165   : > { %v1134_v38 = vpop.f32.mrf.mxu0  ;;  %v621_v59 = vand.u32 2147483647, %v605_v45  ;;  %820 = vperm.xlu1 %1238, %v1665_v63  }
 0x166   : > { %v588_v13 = vmax.f32 %v536_v10, 0.0  ;;  %1148 = vmatprep.mubr.msk.bf16.mxu1 %vm671_vm0, %v629_v34  ;;  %v606_v43 = vsub.f32 %v574_v37, %v590_v12  ;;  %v557_v47 = vadd.f32 %v1134_v38, %v1668_v0  ;;  %v619_v52 = vand.u32 2147483647, %v603_v41 }
 0x167   : > { %v548_v44 = vpop.f32.mrf.mxu0  ;;  %1149 = vmatmul.mubr.msk.bf16.gmra.mxu1 %vm671_vm0, %v630_v40 }
 0x168   : > { %v604_v46 = vsub.f32 %v572_v39, %v588_v13  ;;  %v549_v48 = vadd.f32 %v548_v44, %v1668_v0  ;;  %v622_v53 = vand.u32 2147483647, %v606_v43  ;;  %v593_v61 = vmax.f32 %v557_v47, 0.0 }
 0x169   : > { %v1135_v51 = vpop.f32.mrf.mxu0 }
 0x16a   : > { %v620_v16 = vand.u32 2147483647, %v604_v46  ;;  %v560_v54 = vadd.f32 %v1135_v51, %v1668_v0  ;;  %v591_v57 = vmax.f32 %v549_v48, 0.0  ;;  %v632_v2 = vpack.c.bf16 %v622_v53, %v621_v59 }
 0x16b   : > { %v551_v58 = vpop.f32.mrf.mxu0  ;;  %v609_v7 = vsub.f32 %v577_v15, %v593_v61 }
 0x16c   : > { %v631_v60 = vpack.c.bf16 %v620_v16, %v619_v52  ;;  %v594_v62 = vmax.f32 %v560_v54, 0.0  ;;  %v552_v1 = vadd.f32 %v551_v58, %v1668_v0  ;;  %v607_v5 = vsub.f32 %v575_v14, %v591_v57 }
 0x16d   : > { %v625_v19 = vand.u32 2147483647, %v609_v7  ;;  %v1388_v0 = vmov 0.0  }
 0x16e   : > { %v610_v3 = vsub.f32 %v578_v55, %v594_v62  ;;  %1152 = vmatprep.mubr.msk.bf16.mxu1 %vm671_vm0, %v631_v60  ;;  %v592_v6 = vmax.f32 %v552_v1, 0.0  ;;  %v623_v9 = vand.u32 2147483647, %v607_v5  ;;  %1160 = vmatprep.subr.bf16.mxu1 %v1388_v0 }
 0x16f   : > { %1153 = vmatmul.mubr.msk.bf16.gmra.mxu1 %vm671_vm0, %v632_v2 }
 0x170   : > { %v608_v17 = vsub.f32 %v576_v4, %v592_v6  ;;  %v626_v8 = vand.u32 2147483647, %v610_v3 }
 0x172   : > { %v624_v18 = vand.u32 2147483647, %v608_v17  ;;  %v634_v21 = vpack.c.bf16 %v626_v8, %v625_v19 }
 0x174   : > { %v633_v20 = vpack.c.bf16 %v624_v18, %v623_v9 }
 0x176   : > { %1156 = vmatprep.mubr.msk.bf16.mxu1 %vm671_vm0, %v633_v20 }
 0x177   : > { %1157 = vmatmul.mubr.msk.bf16.gmra.mxu1 %vm671_vm0, %v634_v21 }
 0x178   : > { %1176 = vmatprep.mubr.msk.bf16.mxu1 %vm1389_vm1, %v1388_v0 }
 0x21f   : > { %v1146_v24 = vpop.f32.mrf.mxu1 }
 0x220   : > { %v739_v26 = vadd.f32 %v1146_v24, %v1737_v23 }
 0x221   : > { %v730_v25 = vpop.f32.mrf.mxu1 }
 0x222   : > { %v731_v27 = vadd.f32 %v730_v25, %v1737_v23  ;;  %v795_v30 = vmax.f32 %v739_v26, 0.0  ;;  %v824_v25 = vpop.permute.xlu0 %823  ;;  %v821_v26 = vpop.permute.xlu1 %820 }
 0x223   : > { %v1147_v11 = vpop.f32.mrf.mxu1 }
 0x224   : > { %v742_v28 = vadd.f32 %v1147_v11, %v1737_v23  ;;  %v793_v34 = vmax.f32 %v731_v27, 0.0  ;;  %v825_v11 = vrot.slane %v821_v26, 1 }
 0x225   : > { %v733_v29 = vpop.f32.mrf.mxu1 }
 0x226   : > { %v796_v31 = vmax.f32 %v742_v28, 0.0  ;;  %v734_v32 = vadd.f32 %v733_v29, %v1737_v23 }
 0x227   : > { %v1150_v33 = vpop.f32.mrf.mxu1 }
 0x228   : > { %v1743_v35 = vpack.c.bf16 %v796_v31, %v795_v30  ;;  %v794_v63 = vmax.f32 %v734_v32, 0.0  ;;  %v755_v4 = vadd.f32 %v1150_v33, %v1737_v23 }
 0x229   : > { %v746_v10 = vpop.f32.mrf.mxu1 }
 0x22a   : > { %v1745_v36 = vpack.c.bf16 %v794_v63, %v793_v34  ;;  %v799_v7 = vmax.f32 %v755_v4, 0.0  ;;  %v747_v9 = vadd.f32 %v746_v10, %v1737_v23  ;;  %v835_v24 = vsel %vm827_vm2, %v1743_v35, 0 }
 0x22b   : > { %v1151_v37 = vpop.f32.mrf.mxu1 }
 0x22c   : > { %v758_v2 = vadd.f32 %v1151_v37, %v1737_v23  ;;  %v797_v20 = vmax.f32 %v747_v9, 0.0 }
 0x22d   : > { %v749_v12 = vpop.f32.mrf.mxu1 }
 0x22e   : > { %v800_v5 = vmax.f32 %v758_v2, 0.0  ;;  %v750_v8 = vadd.f32 %v749_v12, %v1737_v23 }
 0x22f   : > { %v1154_v38 = vpop.f32.mrf.mxu1 }
 0x230   : > { %v771_v56 = vadd.f32 %v1154_v38, %v1737_v23  ;;  %v813_v17 = vpack.c.bf16 %v800_v5, %v799_v7  ;;  %v798_v18 = vmax.f32 %v750_v8, 0.0 }
 0x231   : > { %v762_v39 = vpop.f32.mrf.mxu1 }
 0x232   : > { %v803_v59 = vmax.f32 %v771_v56, 0.0  ;;  %v763_v62 = vadd.f32 %v762_v39, %v1737_v23  ;;  %v841_v19 = vsel %vm827_vm2, %v813_v17, 0  ;;  %v812_v21 = vpack.c.bf16 %v798_v18, %v797_v20 }
 0x233   : > { %v1155_v40 = vpop.f32.mrf.mxu1 }
 0x234   : > { %v774_v54 = vadd.f32 %v1155_v40, %v1737_v23  ;;  %v801_v15 = vmax.f32 %v763_v62, 0.0  ;;  %v838_v22 = vsel %vm827_vm2, %v812_v21, 0 }
 0x235   : > { %v765_v41 = vpop.f32.mrf.mxu1 }
 0x236   : > { %v804_v57 = vmax.f32 %v774_v54, 0.0  ;;  %v766_v61 = vadd.f32 %v765_v41, %v1737_v23 }
 0x237   : > { %v1158_v13 = vpop.f32.mrf.mxu1 }
 0x238   : > { %v787_v43 = vadd.f32 %v1158_v13, %v1737_v23  ;;  %v815_v60 = vpack.c.bf16 %v804_v57, %v803_v59  ;;  %v802_v14 = vmax.f32 %v766_v61, 0.0 }
 0x239   : > { %v778_v42 = vpop.f32.mrf.mxu1 }
 0x23a   : > { %v807_v47 = vmax.f32 %v787_v43, 0.0  ;;  %v779_v50 = vadd.f32 %v778_v42, %v1737_v23  ;;  %v847_v1 = vsel %vm827_vm2, %v815_v60, 0  ;;  %v814_v3 = vpack.c.bf16 %v802_v14, %v801_v15 }
 0x23b   : > { %v1159_v44 = vpop.f32.mrf.mxu1 }
 0x23c   : > { %v790_v45 = vadd.f32 %v1159_v44, %v1737_v23  ;;  %v805_v16 = vmax.f32 %v779_v50, 0.0  ;;  %v844_v6 = vsel %vm827_vm2, %v814_v3, 0 }
 0x23d   : > { %v781_v46 = vpop.f32.mrf.mxu1 }
 0x23e   : > { %v808_v48 = vmax.f32 %v790_v45, 0.0  ;;  %v782_v49 = vadd.f32 %v781_v46, %v1737_v23  ;;  %v832_v23 = vsel %vm827_vm2, %v1745_v36, 0 }
 0x240   : > { %v817_v51 = vpack.c.bf16 %v808_v48, %v807_v47  ;;  %v806_v52 = vmax.f32 %v782_v49, 0.0 }
 0x242   : > { %v853_v53 = vsel %vm827_vm2, %v817_v51, 0  ;;  %v816_v55 = vpack.c.bf16 %v806_v52, %v805_v16 }
 0x243   : > { %1161 = vmatpush3.bf16.xpose.msra.mxu1 %v853_v53 }
 0x244   : > { %1162 = vmatprep.subr.bf16.mxu1 %v1388_v0  ;;  %v850_v58 = vsel %vm827_vm2, %v816_v55, 0 }
 0x24b   : > { %1163 = vmatpush3.bf16.xpose.msra.mxu1 %v850_v58 }
 0x24c   : > { %1164 = vmatprep.subr.bf16.mxu1 %v1388_v0 }
 0x253   : > { %1165 = vmatpush3.bf16.xpose.msra.mxu1 %v847_v1 }
 0x254   : > { %1166 = vmatprep.subr.bf16.mxu1 %v1388_v0 }
 0x25b   : > { %1167 = vmatpush3.bf16.xpose.msra.mxu1 %v844_v6 }
 0x25c   : > { %1168 = vmatprep.subr.bf16.mxu1 %v1388_v0 }
 0x263   : > { %1169 = vmatpush3.bf16.xpose.msra.mxu1 %v841_v19 }
 0x264   : > { %1170 = vmatprep.subr.bf16.mxu1 %v1388_v0 }
 0x26b   : > { %1171 = vmatpush3.bf16.xpose.msra.mxu1 %v838_v22 }
 0x26c   : > { %1172 = vmatprep.subr.bf16.mxu1 %v1388_v0 }
 0x273   : > { %1173 = vmatpush3.bf16.xpose.msra.mxu1 %v835_v24 }
 0x274   : > { %1174 = vmatprep.subr.bf16.mxu1 %v1388_v0 }
 0x27b   : > { %1175 = vmatpush3.bf16.xpose.msra.mxu1 %v832_v23 }
 0x282   : > { %1177 = vmatmul.mubr.msk.bf16.vlgmr.msra.gmra.mxu1 %vm827_vm2, %v824_v25 }
 0x342   : > { %v889_v27 = vpop.f32.mrf.mxu1 }
 0x343   : > { %v890_v28 = vadd.f32 %v889_v27, %v825_v11 }
 0x344   : > { %v1178_v29 = vpop.f32.mrf.mxu1 }
 0x345   : > { %v1037_v30 = vmul.f32 -1.442695, %v890_v28 }
 0x346   : > { %v892_v31 = vpop.f32.mrf.mxu1 }
 0x347   : > { %1252 = vpow2.f32 %v1037_v30 }
 0x348   : > { %v1179_v0 = vpop.f32.mrf.mxu1 }
 0x354   : > { %v1253_v32 = vpop.eup %1252 }
 0x355   : > { %v898_v33 = vadd.f32 1.0, %v1253_v32 }
 0x357   : > { %1254 = vrcp.f32 %v898_v33 }
 0x364   : > { %v1255_v34 = vpop.eup %1254 }
 0x365   : > { %901 = vst [vmem:[%s281_s13] sm:$0x1] %v1255_v34 }
 0x366   : > { %1325 = shalt.err (!%p1322_p3)
}
 0x367   : > { %s1326_s23 = scalar_lea.hbm %s1782_s7, 16  ;;  %s1330_s8 = scalar_lea.hbm %s1823_s5, 48 }
 0x368   : > { %p1327_p10 = scmp.ne.s32.totalorder %s1782_s7, %s1326_s23  ;;  %p1331_p5 = scmp.lt.s32.totalorder %s1782_s7, %s1823_s5 }
 0x369   : > { %p1332_p8 = scmp.lt.s32.totalorder %s1330_s8, %s1326_s23 }
 0x36a   : > { %p1328_p11 = pnand %p1327_p10, %p1835_p0 }
 0x36b   : > { %p1333_p6 = por %p1332_p8, %p1331_p5 }
 0x36c   : > { %p1329_p4 = pneg %p1328_p11 }
 0x36e   : > { %p1334_p12 = pnand %p1333_p6, %p1329_p4 }
 0x370   : > { %1337 = shalt.err (!%p1334_p12)
}
 0x371   : > { %1184 = dma.vmem_to_hbm [thread:$0]  (%p1835_p0), %s916_s25, 16, %s1782_s7, %s903_s9  }
 0x372 PF: > { %p1198_p2 = scmp.ge.s32.totalorder %s1380_s21, 2  ;;  %s927_s28 = sand.u32 1, %s1368_s18  }
 0x373   : > { %p1836_p7 = scmp.ne.s32.totalorder %s1830_s6, 0  ;;  %s928_s13 = scalar_lea.sflag [#allocation4], %s927_s28 }
 0x375   : > { %p1194_p9 = pnand %p1198_p2, %p1836_p7 }
 0x377   : > { %p1195_p13 = pneg %p1194_p9 }
 0x379   : > { %1363 = dma.done.wait (%p1195_p13), %s928_s13, 16  }
 0x37a   : > { %1365 = vsyncadd (%p1195_p13), %s928_s13, 4294967280  ;;  %p21_p1 = scmp.ge.s32.totalorder %s1447_s24, 5   ;;  %s1837_s18 = smov %s1372_s19 }
 0x37b   : > { %s1838_s19 = smov %s1376_s20  ;;  %s1839_s20 = smov %s1459_s27 }
 0x37c   : > { %s1840_s21 = smov %s1447_s24  ;;  %23 = sbr.rel (!%p21_p1) target bundleno = 7 (0x7), region = 98 }
 0x381   :  { %932 = vsyncpa [#allocation3], 1 }
 0x382   :  { %934 = vsyncpa [#allocation3 + $0x1], 1 }
 0x383   :  { %935 = vsyncpa [#allocation6], 1 }
 0x384   :  { %937 = vsyncpa [#allocation6 + $0x1], 1 }
 0x385   :  { %938 = vsyncpa [#allocation4], 1 }
 0x386   :  { %940 = vsyncpa [#allocation4 + $0x1], 1 }

</bundles_post_ra>
